<compile_context>
chip_gen: v6e
topology: v6e:2x2x1
jax: 0.10.0
libtpu: 0.0.40
codegen_flags: <defaults>
</compile_context>

<pallas_src>
import jax
import jax.numpy as jnp
from jax.experimental import pallas as pl
from jax.experimental.pallas import tpu as pltpu

EPS = 1e-3  # matches BatchNorm2d(..., eps=0.001)


def _bn_train_kernel(x_ref, gamma_ref, beta_ref, o_ref):
    # x_ref: (c_tile, L) block; L = N*H*W (full lane extent -> full reduction).
    x = x_ref[...]
    xf = x if x.dtype == jnp.float32 else x.astype(jnp.float32)

    inv_n = 1.0 / xf.shape[-1]
    # One pass: sum and sum-of-squares issued back-to-back (both XLU reduces
    # can overlap with the VPU square), stats kept in f32.
    s = jnp.sum(xf, axis=-1, keepdims=True)
    ss = jnp.sum(xf * xf, axis=-1, keepdims=True)
    mean = s * inv_n
    var = jnp.maximum(ss * inv_n - mean * mean, 0.0)
    inv_std = jax.lax.rsqrt(var + EPS)

    # Fold affine: y = x * scale + shift  (2 VALU ops per element).
    scale = inv_std * gamma_ref[...]            # (c_tile, 1)
    shift = beta_ref[...] - mean * scale        # (c_tile, 1)
    o_ref[...] = (xf * scale + shift).astype(o_ref.dtype)


def _pick_channel_tile(C):
    # Largest tile <= 128 that divides C and is a multiple of 8 (sublane rule).
    if C % 8 == 0:
        for t in range(128, 7, -8):
            if C % t == 0:
                return t
    return C  # full-extent block (always legal)


def batchnorm2d_pallas(x_nchw, gamma, beta):
    """Training-mode BatchNorm2d forward (per-channel stats over N, H, W)."""
    N, C, H, W = x_nchw.shape
    L = N * H * W

    if N == 1:
        # NCHW with N=1 is already channel-major: reshape is free (no HBM traffic).
        x2d = x_nchw.reshape(C, L)
    else:
        # General batch: bring channels to the leading axis once.
        x2d = jnp.transpose(x_nchw, (1, 0, 2, 3)).reshape(C, L)

    g2d = gamma.reshape(C, 1).astype(jnp.float32)
    b2d = beta.reshape(C, 1).astype(jnp.float32)

    c_tile = _pick_channel_tile(C)
    grid_c = C // c_tile

    # Scoped-VMEM insurance: in-block + out-block, double-buffered, plus headroom.
    block_bytes = c_tile * L * jnp.dtype(x_nchw.dtype).itemsize
    vmem_limit = int(min(96 * 2**20, max(8 * 2**20, 6 * block_bytes)))

    y2d = pl.pallas_call(
        _bn_train_kernel,
        out_shape=jax.ShapeDtypeStruct((C, L), x_nchw.dtype),
        grid_spec=pltpu.PrefetchScalarGridSpec(
            num_scalar_prefetch=0,
            grid=(grid_c,),
            in_specs=[
                pl.BlockSpec((c_tile, L), lambda i: (i, 0)),
                pl.BlockSpec((c_tile, 1), lambda i: (i, 0)),
                pl.BlockSpec((c_tile, 1), lambda i: (i, 0)),
            ],
            out_specs=pl.BlockSpec((c_tile, L), lambda i: (i, 0)),
        ),
        compiler_params=pltpu.CompilerParams(
            dimension_semantics=("parallel",),
            vmem_limit_bytes=vmem_limit,
        ),
    )(x2d, g2d, b2d)

    if N == 1:
        return y2d.reshape(N, C, H, W)  # free
    return jnp.transpose(y2d.reshape(C, N, H, W), (1, 0, 2, 3))


def _reference(x_nchw, gamma, beta):
    mean = jnp.mean(x_nchw, axis=(0, 2, 3), keepdims=True)
    var = jnp.mean((x_nchw - mean) ** 2, axis=(0, 2, 3), keepdims=True)
    g = gamma.reshape(1, -1, 1, 1)
    b = beta.reshape(1, -1, 1, 1)
    return (x_nchw - mean) * jax.lax.rsqrt(var + EPS) * g + b


if __name__ == "__main__":
    key = jax.random.PRNGKey(0)
    kx, kg, kb = jax.random.split(key, 3)

    # Shape implied by the module's forward: [1, 672, 14, 14].
    N, C, H, W = 1, 672, 14, 14
    x = jax.random.normal(kx, (N, C, H, W), dtype=jnp.float32)

    # PyTorch default init is gamma=1, beta=0; use non-trivial deterministic
    # values to exercise the affine path.
    gamma = 1.0 + 0.1 * jax.random.normal(kg, (C,), dtype=jnp.float32)
    beta = 0.1 * jax.random.normal(kb, (C,), dtype=jnp.float32)

    y = batchnorm2d_pallas(x, gamma, beta)
    y = jax.block_until_ready(y)

    y_ref = _reference(x, gamma, beta)
    assert jnp.allclose(y, y_ref, atol=1e-4, rtol=1e-4), "mismatch vs reference"

    print("KERNEL_OK")
</pallas_src>

<mosaic_0001>
module attributes {stable_mosaic.version = 11 : i64} {
  func.func @_bn_train_kernel(%arg0: i32, %arg1: memref<112x196xf32, #tpu.memory_space<vmem>>, %arg2: memref<112x1xf32, #tpu.memory_space<vmem>>, %arg3: memref<112x1xf32, #tpu.memory_space<vmem>>, %arg4: memref<112x196xf32, #tpu.memory_space<vmem>>) attributes {dimension_semantics = [#tpu.dimension_semantics<parallel>], iteration_bounds = array<i64: 6>, scalar_prefetch = 0 : i64, scratch_operands = 0 : i64, tpu.core_type = #tpu.core_type<tc>, window_params = [{transform_indices = @transform_0, window_bounds = array<i64: 112, 196>}, {transform_indices = @transform_1, window_bounds = array<i64: 112, 1>}, {transform_indices = @transform_2, window_bounds = array<i64: 112, 1>}, {transform_indices = @transform_3, window_bounds = array<i64: 112, 196>}]} {
    %c0 = arith.constant 0 : index
    %c0_0 = arith.constant 0 : index
    %0 = vector.load %arg1[%c0, %c0_0] : memref<112x196xf32, #tpu.memory_space<vmem>>, vector<112x196xf32>
    %cst = arith.constant dense<0.000000e+00> : vector<112xf32>
    %1 = vector.multi_reduction <add>, %0, %cst [1] : vector<112x196xf32> to vector<112xf32>
    %2 = vector.shape_cast %1 : vector<112xf32> to vector<112x1xf32>
    %3 = arith.mulf %0, %0 : vector<112x196xf32>
    %cst_1 = arith.constant dense<0.000000e+00> : vector<112xf32>
    %4 = vector.multi_reduction <add>, %3, %cst_1 [1] : vector<112x196xf32> to vector<112xf32>
    %5 = vector.shape_cast %4 : vector<112xf32> to vector<112x1xf32>
    %cst_2 = arith.constant 0.00510204071 : f32
    %6 = vector.broadcast %cst_2 : f32 to vector<112x1xf32>
    %7 = arith.mulf %2, %6 : vector<112x1xf32>
    %cst_3 = arith.constant 0.00510204071 : f32
    %8 = vector.broadcast %cst_3 : f32 to vector<112x1xf32>
    %9 = arith.mulf %5, %8 : vector<112x1xf32>
    %10 = arith.mulf %7, %7 : vector<112x1xf32>
    %11 = arith.subf %9, %10 : vector<112x1xf32>
    %cst_4 = arith.constant 0.000000e+00 : f32
    %12 = vector.broadcast %cst_4 : f32 to vector<112x1xf32>
    %13 = arith.maximumf %11, %12 : vector<112x1xf32>
    %cst_5 = arith.constant 1.000000e-03 : f32
    %14 = vector.broadcast %cst_5 : f32 to vector<112x1xf32>
    %15 = arith.addf %13, %14 : vector<112x1xf32>
    %16 = math.rsqrt %15 : vector<112x1xf32>
    %c0_6 = arith.constant 0 : index
    %c0_7 = arith.constant 0 : index
    %17 = vector.load %arg2[%c0_6, %c0_7] : memref<112x1xf32, #tpu.memory_space<vmem>>, vector<112x1xf32>
    %18 = arith.mulf %16, %17 : vector<112x1xf32>
    %c0_8 = arith.constant 0 : index
    %c0_9 = arith.constant 0 : index
    %19 = vector.load %arg3[%c0_8, %c0_9] : memref<112x1xf32, #tpu.memory_space<vmem>>, vector<112x1xf32>
    %20 = arith.mulf %7, %18 : vector<112x1xf32>
    %21 = arith.subf %19, %20 : vector<112x1xf32>
    %22 = vector.broadcast %18 : vector<112x1xf32> to vector<112x196xf32>
    %23 = arith.mulf %0, %22 : vector<112x196xf32>
    %24 = vector.broadcast %21 : vector<112x1xf32> to vector<112x196xf32>
    %25 = arith.addf %23, %24 : vector<112x196xf32>
    %c0_10 = arith.constant 0 : index
    %c0_11 = arith.constant 0 : index
    %26 = vector.load %arg4[%c0_10, %c0_11] : memref<112x196xf32, #tpu.memory_space<vmem>>, vector<112x196xf32>
    tpu.vector_store %arg4[%c0_10, %c0_11], %25 {strides = array<i32>} : memref<112x196xf32, #tpu.memory_space<vmem>>, vector<112x196xf32>,
    return
  }
  func.func @transform_0(%arg0: i32) -> (i32, i32) {
    %c0_i32 = arith.constant 0 : i32
    %c0_i32_0 = arith.constant 0 : i32
    return %arg0, %c0_i32 : i32, i32
  }
  func.func @transform_1(%arg0: i32) -> (i32, i32) {
    %c0_i32 = arith.constant 0 : i32
    %c0_i32_0 = arith.constant 0 : i32
    return %arg0, %c0_i32 : i32, i32
  }
  func.func @transform_2(%arg0: i32) -> (i32, i32) {
    %c0_i32 = arith.constant 0 : i32
    %c0_i32_0 = arith.constant 0 : i32
    return %arg0, %c0_i32 : i32, i32
  }
  func.func @transform_3(%arg0: i32) -> (i32, i32) {
    %c0_i32 = arith.constant 0 : i32
    %c0_i32_0 = arith.constant 0 : i32
    return %arg0, %c0_i32 : i32, i32
  }
}

</mosaic_0001>

<bundles_post_ra>
// kernel: tpu_custom_call.1
= control target key start
LH: loop header
LB: loop body
LE: loop exit
PB: predicated region body
PF: predicated region fallthrough
CT: control target
= control target key end

     0   :  { %s949_s12 = smov 0   ;;  %s1404_s0 = inlined_call_operand.vmem [shape: f32[672,196], index: 0, kind: input, shape index: {}]   ;;  %s1405_s1 = inlined_call_operand.vmem [shape: f32[672,1], index: 1, kind: input, shape index: {}]   ;;  %s1406_s2 = inlined_call_operand.vmem [shape: f32[672,1], index: 2, kind: input, shape index: {}]   ;;  %s1407_s3 = inlined_call_operand.vmem [shape: f32[672,196], index: 3, kind: output, shape index: {}]  }
   0x1 LB: > { %s866_s13 = sadd.s32 4294967295, %s926_s12   ;;  %p870_p0 = scmp.ge.s32.totalorder %s926_s12, 1  ;;  %s926_s12 = sphi %s949_s12, %s13_s12  }
   0x2   : > { %p161_p1 = scmp.lt.s32.totalorder %s926_s12, 7 }
   0x4   : > { %p162_p2 = pnand %p870_p0, %p161_p1 }
   0x6   : > { %165 = sbr.rel (%p162_p2) target bundleno = 404 (0x194), region = 32 }
   0xb   : > { %s197_s14 = smul.u32 14, %s866_s13  ;;  %vm251_vm0 = vcmask 556032  }
   0xd   : > { %p198_p3 = scmp.lt.s32.totalorder %s197_s14, 83 }
   0xf   : > { %s1418_s14 = smov (!%p198_p3, %s197_s14), 83 }
  0x10   : > { %s879_s15 = sshll.u32 %s1418_s14, 4  ;;  %s873_s19 = sshll.u32 %s1418_s14, 3 }
  0x11   : > { %s965_s18 = scalar_lea.vmem %s1404_s0, %s879_s15  ;;  %s1215_s22 = scalar_lea.vmem %s1405_s1, %s873_s19 }
  0x12   : > { %v968_v0 = vld [vmem:[%s965_s18 + $0x20] sm:$0xff]  ;;  %v971_v1 = vld [vmem:[%s965_s18 + $0x28] sm:$0xff]  ;;  %v982_v5 = vld [vmem:[%s965_s18 + $0x30] sm:$0xff]  ;;  %s1267_s25 = scalar_lea.vmem %s1406_s2, %s873_s19  ;;  %s1315_s28 = scalar_lea.vmem %s1407_s3, %s879_s15 }
  0x13   : > { %v974_v2 = vld [vmem:[%s965_s18] sm:$0xff]  ;;  %v260_v3 = vsel %vm251_vm0, %v971_v1, 0.0  ;;  %v979_v4 = vld [vmem:[%s965_s18 + $0x8] sm:$0xff]  ;;  %v985_v6 = vld [vmem:[%s965_s18 + $0x38] sm:$0xff]  ;;  %v313_v63 = vmul.f32 %v971_v1, %v971_v1 }
  0x14   : > { %v261_v7 = vadd.f32 %v260_v3, %v968_v0  ;;  %v252_v8 = vsel %vm251_vm0, %v979_v4, 0.0  ;;  %v264_v9 = vsel %vm251_vm0, %v985_v6, 0.0  ;;  %v993_v10 = vld [vmem:[%s965_s18 + $0x10] sm:$0xff]  ;;  %v996_v11 = vld [vmem:[%s965_s18 + $0x18] sm:$0xff]  ;;  %v1005_v15 = vld [vmem:[%s965_s18 + $0x48] sm:$0xff]  ;;  %v309_v55 = vmul.f32 %v979_v4, %v979_v4 }
  0x15   : > { %v253_v12 = vadd.f32 %v252_v8, %v974_v2  ;;  %v256_v13 = vsel %vm251_vm0, %v996_v11, 0.0  ;;  %v1002_v14 = vld [vmem:[%s965_s18 + $0x58] sm:$0xff]  ;;  %v265_v16 = vadd.f32 %v264_v9, %v982_v5  ;;  %v1010_v18 = vld [vmem:[%s965_s18 + $0x50] sm:$0xff]  ;;  %v1015_v20 = vld [vmem:[%s965_s18 + $0x40] sm:$0xff]  ;;  %v268_v21 = vsel %vm251_vm0, %v1005_v15, 0.0 }
  0x16   : > { %262 = vadd.xlane.f32.xlu1 %v261_v7  ;;  %v257_v17 = vadd.f32 %v256_v13, %v993_v10  ;;  %v272_v19 = vsel %vm251_vm0, %v1002_v14, 0.0  ;;  %v1020_v22 = vld [vmem:[%s965_s18 + $0x78] sm:$0xff]  ;;  %v1023_v23 = vld [vmem:[%s965_s18 + $0x68] sm:$0xff]  ;;  %v269_v25 = vadd.f32 %v268_v21, %v1015_v20  ;;  %v1028_v26 = vld [vmem:[%s965_s18 + $0x70] sm:$0xff]  ;;  %v311_v52 = vmul.f32 %v996_v11, %v996_v11 }
  0x17   : > { %254 = vadd.xlane.f32.xlu0 %v253_v12  ;;  %v273_v24 = vadd.f32 %v272_v19, %v1010_v18  ;;  %v280_v27 = vsel %vm251_vm0, %v1020_v22, 0.0  ;;  %v1033_v28 = vld [vmem:[%s965_s18 + $0x60] sm:$0xff]  ;;  %v276_v29 = vsel %vm251_vm0, %v1023_v23, 0.0  ;;  %v1038_v30 = vld [vmem:[%s965_s18 + $0x98] sm:$0xff]  ;;  %v1041_v31 = vld [vmem:[%s965_s18 + $0x88] sm:$0xff]  ;;  %v310_v57 = vmul.f32 %v993_v10, %v993_v10 }
  0x18   : > { %v281_v32 = vadd.f32 %v280_v27, %v1028_v26  ;;  %v277_v33 = vadd.f32 %v276_v29, %v1033_v28  ;;  %v1046_v34 = vld [vmem:[%s965_s18 + $0x90] sm:$0xff]  ;;  %v288_v35 = vsel %vm251_vm0, %v1038_v30, 0.0  ;;  %v1051_v36 = vld [vmem:[%s965_s18 + $0x80] sm:$0xff]  ;;  %v284_v37 = vsel %vm251_vm0, %v1041_v31, 0.0  ;;  %v1056_v38 = vld [vmem:[%s965_s18 + $0xb8] sm:$0xff] }
  0x19   : > { %v1059_v39 = vld [vmem:[%s965_s18 + $0xa8] sm:$0xff]  ;;  %v289_v40 = vadd.f32 %v288_v35, %v1046_v34  ;;  %v285_v41 = vadd.f32 %v284_v37, %v1051_v36  ;;  %v1064_v42 = vld [vmem:[%s965_s18 + $0xb0] sm:$0xff]  ;;  %v296_v43 = vsel %vm251_vm0, %v1056_v38, 0.0  ;;  %v1069_v44 = vld [vmem:[%s965_s18 + $0xa0] sm:$0xff]  ;;  %v340_v59 = vsel %vm251_vm0, %v311_v52, 0.0 }
  0x1a   : > { %266 = vadd.xlane.f32.xlu1 %v265_v16  ;;  %1411 = vst [vmem:[#allocation2_spill] sm:$0xff] %v1059_v39  ;;  %v292_v45 = vsel %vm251_vm0, %v1059_v39, 0.0  ;;  %v1074_v46 = vld [vmem:[%s965_s18 + $0xd8] sm:$0xff]  ;;  %v1077_v47 = vld [vmem:[%s965_s18 + $0xc8] sm:$0xff]  ;;  %v297_v48 = vadd.f32 %v296_v43, %v1064_v42  ;;  %v1082_v50 = vld [vmem:[%s965_s18 + $0xd0] sm:$0xff]  ;;  %v308_v60 = vmul.f32 %v974_v2, %v974_v2  ;;  %v315_v61 = vmul.f32 %v985_v6, %v985_v6 }
  0x1b   : > { %258 = vadd.xlane.f32.xlu0 %v257_v17  ;;  %1412 = vst [vmem:[#allocation3_spill] sm:$0xff] %v1077_v47  ;;  %v293_v49 = vadd.f32 %v292_v45, %v1069_v44  ;;  %v304_v51 = vsel %vm251_vm0, %v1074_v46, 0.0  ;;  %v1089_v53 = vld [vmem:[%s965_s18 + $0xc0] sm:$0xff]  ;;  %v300_v54 = vsel %vm251_vm0, %v1077_v47, 0.0  ;;  %v336_v62 = vsel %vm251_vm0, %v309_v55, 0.0 }
  0x1c   : > { %1413 = vst [vmem:[#allocation4_spill] sm:$0xff] %v1089_v53  ;;  %v305_v56 = vadd.f32 %v304_v51, %v1082_v50  ;;  %v301_v58 = vadd.f32 %v300_v54, %v1089_v53  ;;  %v341_v3 = vadd.f32 %v340_v59, %v310_v57  ;;  %v314_v7 = vmul.f32 %v982_v5, %v982_v5 }
  0x1d   : > { %v337_v8 = vadd.f32 %v336_v62, %v308_v60  ;;  %v348_v9 = vsel %vm251_vm0, %v315_v61, 0.0  ;;  %v312_v12 = vmul.f32 %v968_v0, %v968_v0  ;;  %v319_v13 = vmul.f32 %v1002_v14, %v1002_v14 }
  0x1e   : > { %274 = vadd.xlane.f32.xlu1 %v273_v24  ;;  %v344_v16 = vsel %vm251_vm0, %v313_v63, 0.0  ;;  %v317_v17 = vmul.f32 %v1005_v15, %v1005_v15  ;;  %v349_v19 = vadd.f32 %v348_v9, %v314_v7  ;;  %v318_v21 = vmul.f32 %v1010_v18, %v1010_v18 }
  0x1f   : > { %270 = vadd.xlane.f32.xlu0 %v269_v25  ;;  %v345_v24 = vadd.f32 %v344_v16, %v312_v12  ;;  %v356_v25 = vsel %vm251_vm0, %v319_v13, 0.0  ;;  %v316_v27 = vmul.f32 %v1015_v20, %v1015_v20  ;;  %v323_v29 = vmul.f32 %v1020_v22, %v1020_v22 }
  0x20   : > { %v357_v35 = vadd.f32 %v356_v25, %v318_v21  ;;  %v322_v37 = vmul.f32 %v1028_v26, %v1028_v26  ;;  %v320_v43 = vmul.f32 %v1033_v28, %v1033_v28  ;;  %v327_v45 = vmul.f32 %v1038_v30, %v1038_v30 }
  0x21   : > { %v326_v52 = vmul.f32 %v1046_v34, %v1046_v34  ;;  %v331_v57 = vmul.f32 %v1056_v38, %v1056_v38  ;;  %v329_v59 = vmul.f32 %v1059_v39, %v1059_v39  ;;  %v330_v61 = vmul.f32 %v1064_v42, %v1064_v42 }
  0x22   : > { %282 = vadd.xlane.f32.xlu1 %v281_v32  ;;  %v352_v32 = vsel %vm251_vm0, %v317_v17, 0.0  ;;  %v372_v55 = vsel %vm251_vm0, %v327_v45, 0.0  ;;  %v335_v7 = vmul.f32 %v1074_v46, %v1074_v46  ;;  %v333_v9 = vmul.f32 %v1077_v47, %v1077_v47 }
  0x23   : > { %278 = vadd.xlane.f32.xlu0 %v277_v33  ;;  %v321_v33 = vmul.f32 %v1023_v23, %v1023_v23  ;;  %v373_v60 = vadd.f32 %v372_v55, %v326_v52  ;;  %v380_v63 = vsel %vm251_vm0, %v331_v57, 0.0  ;;  %v334_v13 = vmul.f32 %v1082_v50, %v1082_v50 }
  0x24   : > { %v381_v12 = vadd.f32 %v380_v63, %v330_v61  ;;  %v388_v17 = vsel %vm251_vm0, %v335_v7, 0.0  ;;  %v384_v21 = vsel %vm251_vm0, %v333_v9, 0.0 }
  0x26   : > { %290 = vadd.xlane.f32.xlu1 %v289_v40  ;;  %v353_v40 = vadd.f32 %v352_v32, %v316_v27  ;;  %v928_v27 = vmov 0  }
  0x27   : > { %286 = vadd.xlane.f32.xlu0 %v285_v41  ;;  %v364_v41 = vsel %vm251_vm0, %v323_v29, 0.0  ;;  %891 = vset.pattern.permute.xlu1 %v928_v27 }
  0x28   : > { %v365_v51 = vadd.f32 %v364_v41, %v322_v37  ;;  %890 = vset.pattern.permute.xlu0 %v928_v27 }
  0x2a   : > { %298 = vadd.xlane.f32.xlu1 %v297_v48  ;;  %v360_v48 = vsel %vm251_vm0, %v321_v33, 0.0 }
  0x2b   : > { %294 = vadd.xlane.f32.xlu0 %v293_v49  ;;  %v325_v49 = vmul.f32 %v1041_v31, %v1041_v31  ;;  %v361_v54 = vadd.f32 %v360_v48, %v320_v43 }
  0x2e   : > { %306 = vadd.xlane.f32.xlu1 %v305_v56  ;;  %v324_v56 = vmul.f32 %v1051_v36, %v1051_v36 }
  0x2f   : > { %302 = vadd.xlane.f32.xlu0 %v301_v58  ;;  %v368_v58 = vsel %vm251_vm0, %v325_v49, 0.0 }
  0x30   : > { %v369_v62 = vadd.f32 %v368_v58, %v324_v56 }
  0x32   : > { %342 = vadd.xlane.f32.xlu1 %v341_v3  ;;  %v328_v3 = vmul.f32 %v1069_v44, %v1069_v44 }
  0x33   : > { %338 = vadd.xlane.f32.xlu0 %v337_v8  ;;  %v376_v8 = vsel %vm251_vm0, %v329_v59, 0.0 }
  0x34   : > { %v377_v16 = vadd.f32 %v376_v8, %v328_v3 }
  0x36   : > { %350 = vadd.xlane.f32.xlu1 %v349_v19  ;;  %v332_v19 = vmul.f32 %v1089_v53, %v1089_v53 }
  0x37   : > { %346 = vadd.xlane.f32.xlu0 %v345_v24  ;;  %v389_v24 = vadd.f32 %v388_v17, %v334_v13 }
  0x38   : > { %v385_v25 = vadd.f32 %v384_v21, %v332_v19 }
  0x3a   : > { %358 = vadd.xlane.f32.xlu1 %v357_v35 }
  0x3b   : > { %354 = vadd.xlane.f32.xlu0 %v353_v40 }
  0x3e   : > { %366 = vadd.xlane.f32.xlu1 %v365_v51 }
  0x3f   : > { %362 = vadd.xlane.f32.xlu0 %v361_v54 }
  0x42   : > { %374 = vadd.xlane.f32.xlu1 %v373_v60 }
  0x43   : > { %370 = vadd.xlane.f32.xlu0 %v369_v62 }
  0x46   : > { %382 = vadd.xlane.f32.xlu1 %v381_v12 }
  0x47   : > { %378 = vadd.xlane.f32.xlu0 %v377_v16 }
  0x4a   : > { %390 = vadd.xlane.f32.xlu1 %v389_v24 }
  0x4b   : > { %386 = vadd.xlane.f32.xlu0 %v385_v25 }
  0x9f   : > { %v263_v29 = vpop.xlane.xlu1 %262 }
  0xa0   : > { %v255_v32 = vpop.xlane.xlu0 %254  ;;  %v1179_v62 = vmul.f32 0.0051020407, %v263_v29 }
  0xa1   : > { %v1173_v56 = vmul.f32 0.0051020407, %v255_v32 }
  0xa2   : > { %v422_v21 = vmul.f32 %v1179_v62, %v1179_v62 }
  0xa3   : > { %v267_v33 = vpop.xlane.xlu1 %266  ;;  %v420_v63 = vmul.f32 %v1173_v56, %v1173_v56 }
  0xa4   : > { %v259_v35 = vpop.xlane.xlu0 %258  ;;  %v1175_v58 = vmul.f32 0.0051020407, %v267_v33 }
  0xa5   : > { %v1169_v54 = vmul.f32 0.0051020407, %v259_v35 }
  0xa6   : > { %v423_v13 = vmul.f32 %v1175_v58, %v1175_v58 }
  0xa7   : > { %v275_v37 = vpop.xlane.xlu1 %274  ;;  %v421_v59 = vmul.f32 %v1169_v54, %v1169_v54 }
  0xa8   : > { %v271_v40 = vpop.xlane.xlu0 %270  ;;  %v1183_v8 = vmul.f32 0.0051020407, %v275_v37 }
  0xa9   : > { %v1189_v24 = vmul.f32 0.0051020407, %v271_v40 }
  0xaa   : > { %v425_v33 = vmul.f32 %v1183_v8, %v1183_v8 }
  0xab   : > { %v283_v41 = vpop.xlane.xlu1 %282  ;;  %v424_v40 = vmul.f32 %v1189_v24, %v1189_v24 }
  0xac   : > { %v279_v43 = vpop.xlane.xlu0 %278 }
  0xaf   : > { %v291_v45 = vpop.xlane.xlu1 %290 }
  0xb0   : > { %v1163_v48 = vpop.xlane.xlu0 %286 }
  0xb3   : > { %v299_v49 = vpop.xlane.xlu1 %298 }
  0xb4   : > { %v1165_v51 = vpop.xlane.xlu0 %294 }
  0xb7   : > { %v1167_v52 = vpop.xlane.xlu1 %306 }
  0xb8   : > { %v1171_v55 = vpop.xlane.xlu0 %302 }
  0xbb   : > { %v343_v57 = vpop.xlane.xlu1 %342 }
  0xbc   : > { %v407_v60 = vmul.f32 0.0051020407, %v343_v57  ;;  %v339_v61 = vpop.xlane.xlu0 %338 }
  0xbd   : > { %v406_v3 = vmul.f32 0.0051020407, %v339_v61 }
  0xbe   : > { %v435_v7 = vsub.f32 %v407_v60, %v421_v59  ;;  %v1193_v59 = vmul.f32 0.0051020407, %v279_v43 }
  0xbf   : > { %v434_v9 = vsub.f32 %v406_v3, %v420_v63  ;;  %v351_v12 = vpop.xlane.xlu1 %350 }
  0xc0   : > { %v449_v16 = vmax.f32 %v435_v7, 0.0  ;;  %v409_v17 = vmul.f32 0.0051020407, %v351_v12  ;;  %v347_v19 = vpop.xlane.xlu0 %346  ;;  %v426_v43 = vmul.f32 %v1193_v59, %v1193_v59 }
  0xc1   : > { %v448_v25 = vmax.f32 %v434_v9, 0.0  ;;  %v408_v27 = vmul.f32 0.0051020407, %v347_v19  ;;  %v1197_v9 = vmul.f32 0.0051020407, %v283_v41 }
  0xc2   : > { %v463_v29 = vadd.f32 0.001, %v449_v16  ;;  %v437_v32 = vsub.f32 %v409_v17, %v423_v13 }
  0xc3   : > { %v462_v35 = vadd.f32 0.001, %v448_v25  ;;  %v436_v37 = vsub.f32 %v408_v27, %v422_v21  ;;  %v359_v57 = vpop.xlane.xlu1 %358  ;;  %v1201_v21 = vmul.f32 0.0051020407, %v291_v45  ;;  %v427_v41 = vmul.f32 %v1197_v9, %v1197_v9 }
  0xc4   : > { %892 = vrsqrt.f32 %v463_v29  ;;  %v451_v60 = vmax.f32 %v437_v32, 0.0  ;;  %v411_v61 = vmul.f32 0.0051020407, %v359_v57  ;;  %v355_v63 = vpop.xlane.xlu0 %354  ;;  %v1208_v45 = vmul.f32 0.0051020407, %v299_v49 }
  0xc5   : > { %894 = vrsqrt.f32 %v462_v35  ;;  %v450_v3 = vmax.f32 %v436_v37, 0.0  ;;  %v410_v7 = vmul.f32 0.0051020407, %v355_v63 }
  0xc6   : > { %v465_v12 = vadd.f32 0.001, %v451_v60  ;;  %v439_v16 = vsub.f32 %v411_v61, %v425_v33  ;;  %v429_v60 = vmul.f32 %v1201_v21, %v1201_v21 }
  0xc7   : > { %v464_v13 = vadd.f32 0.001, %v450_v3  ;;  %v438_v17 = vsub.f32 %v410_v7, %v424_v40  ;;  %v367_v19 = vpop.xlane.xlu1 %366  ;;  %v1218_v40 = vmul.f32 0.0051020407, %v1163_v48 }
  0xc8   : > { %v363_v25 = vpop.xlane.xlu0 %362  ;;  %v413_v29 = vmul.f32 0.0051020407, %v367_v19  ;;  %v453_v35 = vmax.f32 %v439_v16, 0.0  ;;  %v431_v19 = vmul.f32 %v1208_v45, %v1208_v45 }
  0xc9   : > { %896 = vrsqrt.f32 %v464_v13  ;;  %v452_v27 = vmax.f32 %v438_v17, 0.0  ;;  %v412_v32 = vmul.f32 0.0051020407, %v363_v25  ;;  %v491_v17 = vld [vmem:[%s1215_s22 + $0x8] sm:$0xff] }
  0xca   : > { %898 = vrsqrt.f32 %v465_v12  ;;  %v441_v3 = vsub.f32 %v413_v29, %v427_v41  ;;  %v467_v13 = vadd.f32 0.001, %v453_v35  ;;  %v428_v29 = vmul.f32 %v1218_v40, %v1218_v40 }
  0xcb   : > { %v466_v33 = vadd.f32 0.001, %v452_v27  ;;  %v440_v37 = vsub.f32 %v412_v32, %v426_v43  ;;  %v375_v57 = vpop.xlane.xlu1 %374  ;;  %v1224_v43 = vmul.f32 0.0051020407, %v1167_v52  ;;  %v1230_v41 = vmul.f32 0.0051020407, %v1165_v51 }
  0xcc   : > { %v415_v61 = vmul.f32 0.0051020407, %v375_v57  ;;  %v371_v63 = vpop.xlane.xlu0 %370  ;;  %v490_v57 = vld [vmem:[%s1215_s22] sm:$0xff]  ;;  %v455_v35 = vmax.f32 %v441_v3, 0.0 }
  0xcd   : > { %v454_v7 = vmax.f32 %v440_v37, 0.0  ;;  %900 = vrsqrt.f32 %v466_v33  ;;  %v414_v49 = vmul.f32 0.0051020407, %v371_v63  ;;  %v433_v53 = vmul.f32 %v1224_v43, %v1224_v43 }
  0xce   : > { %v443_v12 = vsub.f32 %v415_v61, %v429_v60  ;;  %902 = vrsqrt.f32 %v467_v13  ;;  %v1243_v13 = vmul.f32 0.0051020407, %v1171_v55 }
  0xcf   : > { %v383_v16 = vpop.xlane.xlu1 %382  ;;  %v468_v37 = vadd.f32 0.001, %v454_v7  ;;  %v442_v52 = vsub.f32 %v414_v49, %v428_v29  ;;  %v492_v7 = vld [vmem:[%s1215_s22 + $0x10] sm:$0xff] }
  0xd0   : > { %v457_v25 = vmax.f32 %v443_v12, 0.0  ;;  %v417_v27 = vmul.f32 0.0051020407, %v383_v16  ;;  %v379_v32 = vpop.xlane.xlu0 %378  ;;  %v432_v55 = vmul.f32 %v1243_v13, %v1243_v13 }
  0xd1   : > { %v893_v48 = vpop.eup %892  ;;  %v416_v12 = vmul.f32 0.0051020407, %v379_v32  ;;  %v456_v32 = vmax.f32 %v442_v52, 0.0 }
  0xd2   : > { %v895_v33 = vpop.eup %894  ;;  %v471_v60 = vadd.f32 0.001, %v457_v25  ;;  %v445_v61 = vsub.f32 %v417_v27, %v431_v19  ;;  %v1232_v63 = vmul.f32 %v893_v48, %v491_v17  ;;  %v430_v17 = vmul.f32 %v1230_v41, %v1230_v41 }
  0xd3   : > { %v391_v16 = vpop.xlane.xlu1 %390  ;;  %v1234_v47 = vmul.f32 %v895_v33, %v490_v57  ;;  %v469_v19 = vadd.f32 0.001, %v455_v35 }
  0xd4   : > { %904 = vrsqrt.f32 %v471_v60  ;;  %v459_v51 = vmax.f32 %v445_v61, 0.0  ;;  %v419_v39 = vmul.f32 0.0051020407, %v391_v16  ;;  %v387_v3 = vpop.xlane.xlu0 %386  ;;  %567 = vperm.xlu1 %891, %v1232_v63   ;;  %v444_v57 = vsub.f32 %v416_v12, %v430_v17  ;;  %v493_v61 = vld [vmem:[%s1215_s22 + $0x18] sm:$0xff]  ;;  %v494_v16 = vld [vmem:[%s1215_s22 + $0x20] sm:$0xff]  ;;  %v499_v17 = vld [vmem:[%s1215_s22 + $0x48] sm:$0xff] }
  0xd5   : > { %562 = vperm.xlu0 %890, %v1234_v47   ;;  %906 = vrsqrt.f32 %v468_v37  ;;  %v418_v48 = vmul.f32 0.0051020407, %v387_v3 }
  0xd6   : > { %v897_v49 = vpop.eup %896  ;;  %v473_v25 = vadd.f32 0.001, %v459_v51  ;;  %v447_v27 = vsub.f32 %v419_v39, %v433_v53  ;;  %v470_v39 = vadd.f32 0.001, %v456_v32  ;;  %v458_v53 = vmax.f32 %v444_v57, 0.0 }
  0xd7   : > { %v1246_v29 = vmul.f32 %v897_v49, %v492_v7  ;;  %v899_v33 = vpop.eup %898  ;;  %v446_v37 = vsub.f32 %v418_v48, %v432_v55 }
  0xd8   : > { %908 = vrsqrt.f32 %v473_v25  ;;  %v461_v60 = vmax.f32 %v447_v27, 0.0  ;;  %v507_v52 = vmul.f32 %v899_v33, %v493_v61  ;;  %v472_v51 = vadd.f32 0.001, %v458_v53  ;;  %v501_v33 = vld [vmem:[%s1215_s22 + $0x58] sm:$0xff]  ;;  %v503_v53 = vld [vmem:[%s1215_s22 + $0x68] sm:$0xff] }
  0xd9   : > { %572 = vperm.xlu1 %891, %v1246_v29   ;;  %910 = vrsqrt.f32 %v469_v19  ;;  %v460_v3 = vmax.f32 %v446_v37, 0.0  ;;  %v495_v19 = vld [vmem:[%s1215_s22 + $0x28] sm:$0xff]  ;;  %v497_v37 = vld [vmem:[%s1215_s22 + $0x38] sm:$0xff] }
  0xda   : > { %v475_v35 = vadd.f32 0.001, %v461_v60  ;;  %v901_v12 = vpop.eup %900  ;;  %v496_v60 = vld [vmem:[%s1215_s22 + $0x30] sm:$0xff] }
  0xdb   : > { %v1253_v7 = vmul.f32 %v901_v12, %v494_v16  ;;  %v903_v49 = vpop.eup %902  ;;  %v474_v57 = vadd.f32 0.001, %v460_v3 }
  0xdc   : > { %912 = vrsqrt.f32 %v475_v35  ;;  %v509_v48 = vmul.f32 %v903_v49, %v495_v19  ;;  %v498_v19 = vld [vmem:[%s1215_s22 + $0x40] sm:$0xff] }
  0xdd   : > { %577 = vperm.xlu1 %891, %v507_v52   ;;  %914 = vrsqrt.f32 %v470_v39 }
  0xde   : > { %916 = vrsqrt.f32 %v472_v51  ;;  %v533_v51 = vmul.f32 %v1232_v63, %v1169_v54  ;;  %v537_v63 = vmul.f32 %v509_v48, %v1183_v8 }
  0xdf   : > { %918 = vrsqrt.f32 %v474_v57 }
  0xe1   : > { %v905_v25 = vpop.eup %904  ;;  %582 = vperm.xlu1 %891, %v1253_v7  }
  0xe2   : > { %v513_v27 = vmul.f32 %v905_v25, %v499_v17  ;;  %v907_v32 = vpop.eup %906  ;;  %v519_v17 = vld [vmem:[%s1267_s25 + $0x8] sm:$0xff] }
  0xe3   : > { %v510_v39 = vmul.f32 %v907_v32, %v496_v60  ;;  %v547_v25 = vsub.f32 %v519_v17, %v533_v51  ;;  %v535_v32 = vmul.f32 %v507_v52, %v1175_v58  ;;  %v525_v17 = vld [vmem:[%s1267_s25 + $0x38] sm:$0xff] }
  0xe4   : > { %607 = vperm.xlu0 %890, %v513_v27  }
  0xe5   : > { %v909_v61 = vpop.eup %908  ;;  %587 = vperm.xlu1 %891, %v509_v48   ;;  %v541_v48 = vmul.f32 %v513_v27, %v1201_v21  ;;  %v522_v21 = vld [vmem:[%s1267_s25 + $0x20] sm:$0xff] }
  0xe6   : > { %v515_v55 = vmul.f32 %v909_v61, %v501_v33  ;;  %v911_v35 = vpop.eup %910  ;;  %v521_v33 = vld [vmem:[%s1267_s25 + $0x18] sm:$0xff]  ;;  %v500_v61 = vld [vmem:[%s1215_s22 + $0x50] sm:$0xff] }
  0xe7   : > { %v511_v3 = vmul.f32 %v911_v35, %v497_v37  ;;  %v549_v54 = vsub.f32 %v521_v33, %v535_v32  ;;  %v527_v32 = vld [vmem:[%s1267_s25 + $0x48] sm:$0xff]  ;;  %v534_v33 = vmul.f32 %v1246_v29, %v1179_v62 }
  0xe8   : > { %617 = vperm.xlu0 %890, %v515_v55  }
  0xe9   : > { %v913_v12 = vpop.eup %912  ;;  %592 = vperm.xlu1 %891, %v510_v39   ;;  %v539_v52 = vmul.f32 %v511_v3, %v1197_v9  ;;  %v520_v9 = vld [vmem:[%s1267_s25 + $0x10] sm:$0xff] }
  0xea   : > { %v517_v16 = vmul.f32 %v913_v12, %v503_v53  ;;  %v915_v49 = vpop.eup %914  ;;  %v523_v53 = vld [vmem:[%s1267_s25 + $0x28] sm:$0xff]  ;;  %v502_v12 = vld [vmem:[%s1215_s22 + $0x60] sm:$0xff] }
  0xeb   : > { %v512_v57 = vmul.f32 %v915_v49, %v498_v19  ;;  %v917_v60 = vpop.eup %916  ;;  %v551_v58 = vsub.f32 %v523_v53, %v537_v63  ;;  %v532_v49 = vmul.f32 %v1234_v47, %v1173_v56  ;;  %v518_v19 = vld [vmem:[%s1267_s25] sm:$0xff]  ;;  %v553_v8 = vsub.f32 %v525_v17, %v539_v52 }
  0xec   : > { %627 = vperm.xlu0 %890, %v517_v16   ;;  %v514_v35 = vmul.f32 %v917_v60, %v500_v61  ;;  %v919_v37 = vpop.eup %918  ;;  %v543_v47 = vmul.f32 %v515_v55, %v1208_v45  ;;  %v548_v56 = vsub.f32 %v520_v9, %v534_v33  ;;  %v529_v60 = vld [vmem:[%s1267_s25 + $0x58] sm:$0xff]  ;;  %v536_v61 = vmul.f32 %v1253_v7, %v1189_v24  ;;  %v524_v45 = vld [vmem:[%s1267_s25 + $0x30] sm:$0xff]  ;;  %v526_v7 = vld [vmem:[%s1267_s25 + $0x40] sm:$0xff] }
  0xed   : > { %597 = vperm.xlu1 %891, %v511_v3   ;;  %v516_v51 = vmul.f32 %v919_v37, %v502_v12  ;;  %v555_v3 = vsub.f32 %v527_v32, %v541_v48  ;;  %v545_v62 = vmul.f32 %v517_v16, %v1224_v43  ;;  %v538_v63 = vmul.f32 %v510_v39, %v1193_v59  ;;  %v530_v59 = vld [vmem:[%s1267_s25 + $0x60] sm:$0xff] }
  0xee   : > { %v557_v27 = vsub.f32 %v529_v60, %v543_v47  ;;  %v550_v29 = vsub.f32 %v522_v21, %v536_v61  ;;  %v540_v24 = vmul.f32 %v512_v57, %v1218_v40  ;;  %v542_v12 = vmul.f32 %v514_v35, %v1230_v41 }
  0xef   : > { %v552_v53 = vsub.f32 %v524_v45, %v538_v63  ;;  %v544_v16 = vmul.f32 %v516_v51, %v1243_v13 }
  0xf0   : > { %665 = vperm.xlu0 %890, %v547_v25   ;;  %v546_v25 = vsub.f32 %v518_v19, %v532_v49  ;;  %v554_v37 = vsub.f32 %v526_v7, %v540_v24 }
  0xf1   : > { %602 = vperm.xlu1 %891, %v512_v57   ;;  %v558_v39 = vsub.f32 %v530_v59, %v544_v16 }
  0xf4   : > { %675 = vperm.xlu0 %890, %v549_v54   ;;  %v531_v54 = vld [vmem:[%s1267_s25 + $0x68] sm:$0xff] }
  0xf5   : > { %612 = vperm.xlu1 %891, %v514_v35   ;;  %v559_v55 = vsub.f32 %v531_v54, %v545_v62 }
  0xf8   : > { %685 = vperm.xlu0 %890, %v551_v58   ;;  %v528_v58 = vld [vmem:[%s1267_s25 + $0x50] sm:$0xff] }
  0xf9   : > { %622 = vperm.xlu1 %891, %v516_v51   ;;  %v556_v43 = vsub.f32 %v528_v58, %v542_v12 }
  0xfc   : > { %695 = vperm.xlu0 %890, %v553_v8  }
  0xfd   : > { %660 = vperm.xlu1 %891, %v546_v25  }
 0x100   : > { %705 = vperm.xlu0 %890, %v555_v3  }
 0x101   : > { %670 = vperm.xlu1 %891, %v548_v56  }
 0x104   : > { %715 = vperm.xlu0 %890, %v557_v27  }
 0x105   : > { %680 = vperm.xlu1 %891, %v550_v29  }
 0x108   : > { %725 = vperm.xlu0 %890, %v559_v55  }
 0x109   : > { %690 = vperm.xlu1 %891, %v552_v53  }
 0x10d   : > { %700 = vperm.xlu1 %891, %v554_v37  }
 0x111   : > { %710 = vperm.xlu1 %891, %v556_v43  }
 0x115   : > { %720 = vperm.xlu1 %891, %v558_v39  }
 0x14f   : > { %v568_v52 = vpop.permute.xlu1 %567 }
 0x150   : > { %v563_v40 = vpop.permute.xlu0 %562  ;;  %v632_v13 = vmul.f32 %v568_v52, %v993_v10  ;;  %v633_v51 = vmul.f32 %v568_v52, %v996_v11 }
 0x154   : > { %v573_v17 = vpop.permute.xlu1 %572 }
 0x158   : > { %v578_v49 = vpop.permute.xlu1 %577 }
 0x159   : > { %v636_v47 = vmul.f32 %v578_v49, %v982_v5  ;;  %v637_v10 = vmul.f32 %v578_v49, %v985_v6 }
 0x15c   : > { %v583_v57 = vpop.permute.xlu1 %582 }
 0x15f   : > { %v608_v19 = vpop.permute.xlu0 %607 }
 0x160   : > { %v588_v8 = vpop.permute.xlu1 %587  ;;  %v648_v12 = vmul.f32 %v608_v19, %v1046_v34 }
 0x161   : > { %v640_v21 = vmul.f32 %v588_v8, %v1010_v18  ;;  %v641_v27 = vmul.f32 %v588_v8, %v1002_v14  ;;  %v630_v14 = vmul.f32 %v563_v40, %v974_v2  ;;  %v631_v18 = vmul.f32 %v563_v40, %v979_v4 }
 0x162   : > { %v635_v2 = vmul.f32 %v573_v17, %v971_v1  ;;  %v639_v1 = vmul.f32 %v583_v57, %v1005_v15 }
 0x163   : > { %v618_v48 = vpop.permute.xlu0 %617 }
 0x164   : > { %v1304_v25 = vpop.permute.xlu1 %592  ;;  %v653_v39 = vmul.f32 %v618_v48, %v1056_v38 }
 0x165   : > { %v642_v15 = vmul.f32 %v1304_v25, %v1033_v28 }
 0x167   : > { %v1306_v41 = vpop.permute.xlu0 %627 }
 0x168   : > { %v598_v35 = vpop.permute.xlu1 %597 }
 0x169   : > { %v644_v54 = vmul.f32 %v598_v35, %v1028_v26  ;;  %v645_v63 = vmul.f32 %v598_v35, %v1020_v22  ;;  %v649_v22 = vmul.f32 %v608_v19, %v1038_v30  ;;  %v634_v26 = vmul.f32 %v573_v17, %v968_v0 }
 0x16a   : > { %v652_v30 = vmul.f32 %v618_v48, %v1064_v42  ;;  %v638_v0 = vmul.f32 %v583_v57, %v1015_v20  ;;  %v656_v19 = vmul.f32 %v1306_v41, %v1082_v50  ;;  %v657_v20 = vmul.f32 %v1306_v41, %v1074_v46 }
 0x16b   : > { %v666_v32 = vpop.permute.xlu0 %665  ;;  %v643_v57 = vmul.f32 %v1304_v25, %v1023_v23 }
 0x16c   : > { %v1317_v33 = vpop.permute.xlu1 %602  ;;  %v730_v9 = vadd.f32 %v666_v32, %v632_v13  ;;  %v731_v3 = vadd.f32 %v666_v32, %v633_v51 }
 0x16d   : > { %v646_v28 = vmul.f32 %v1317_v33, %v1051_v36  ;;  %v647_v23 = vmul.f32 %v1317_v33, %v1041_v31 }
 0x16e   : > { %758 = vst [vmem:[%s1315_s28 + $0x10] sm:$0xff] %v730_v9  ;;  %759 = vst.msk [vmem:[%s1315_s28 + $0x18] sm:$0xff] %vm251_vm0, %v731_v3  ;;  %v1414_v9 = vld [vmem:[#allocation2_spill] sm:$0xff] }
 0x16f   : > { %v676_v11 = vpop.permute.xlu0 %675 }
 0x170   : > { %v1324_v56 = vpop.permute.xlu1 %612  ;;  %v734_v60 = vadd.f32 %v676_v11, %v636_v47  ;;  %v735_v61 = vadd.f32 %v676_v11, %v637_v10  ;;  %v1415_v47 = vld [vmem:[#allocation4_spill] sm:$0xff]  ;;  %v1416_v11 = vld [vmem:[#allocation3_spill] sm:$0xff] }
 0x171   : > { %v650_v32 = vmul.f32 %v1324_v56, %v1069_v44  ;;  %v651_v3 = vmul.f32 %v1324_v56, %v1414_v9 }
 0x172   : > { %762 = vst [vmem:[%s1315_s28 + $0x30] sm:$0xff] %v734_v60  ;;  %763 = vst.msk [vmem:[%s1315_s28 + $0x38] sm:$0xff] %vm251_vm0, %v735_v61 }
 0x173   : > { %v686_v5 = vpop.permute.xlu0 %685 }
 0x174   : > { %v1331_v62 = vpop.permute.xlu1 %622  ;;  %v738_v6 = vadd.f32 %v686_v5, %v640_v21  ;;  %v739_v29 = vadd.f32 %v686_v5, %v641_v27 }
 0x175   : > { %v654_v10 = vmul.f32 %v1331_v62, %v1415_v47  ;;  %v655_v60 = vmul.f32 %v1331_v62, %v1416_v11 }
 0x176   : > { %766 = vst [vmem:[%s1315_s28 + $0x50] sm:$0xff] %v738_v6  ;;  %767 = vst.msk [vmem:[%s1315_s28 + $0x58] sm:$0xff] %vm251_vm0, %v739_v29 }
 0x177   : > { %v696_v45 = vpop.permute.xlu0 %695 }
 0x178   : > { %v661_v55 = vpop.permute.xlu1 %660  ;;  %v742_v53 = vadd.f32 %v696_v45, %v644_v54  ;;  %v743_v24 = vadd.f32 %v696_v45, %v645_v63 }
 0x179   : > { %v728_v7 = vadd.f32 %v661_v55, %v630_v14  ;;  %v729_v37 = vadd.f32 %v661_v55, %v631_v18 }
 0x17a   : > { %770 = vst [vmem:[%s1315_s28 + $0x70] sm:$0xff] %v742_v53  ;;  %771 = vst.msk [vmem:[%s1315_s28 + $0x78] sm:$0xff] %vm251_vm0, %v743_v24 }
 0x17b   : > { %756 = vst [vmem:[%s1315_s28] sm:$0xff] %v728_v7  ;;  %757 = vst.msk [vmem:[%s1315_s28 + $0x8] sm:$0xff] %vm251_vm0, %v729_v37  ;;  %v706_v4 = vpop.permute.xlu0 %705 }
 0x17c   : > { %v671_v58 = vpop.permute.xlu1 %670  ;;  %v746_v43 = vadd.f32 %v706_v4, %v648_v12  ;;  %v747_v34 = vadd.f32 %v706_v4, %v649_v22 }
 0x17d   : > { %v732_v16 = vadd.f32 %v671_v58, %v634_v26  ;;  %v733_v59 = vadd.f32 %v671_v58, %v635_v2 }
 0x17e   : > { %774 = vst [vmem:[%s1315_s28 + $0x90] sm:$0xff] %v746_v43  ;;  %775 = vst.msk [vmem:[%s1315_s28 + $0x98] sm:$0xff] %vm251_vm0, %v747_v34 }
 0x17f   : > { %760 = vst [vmem:[%s1315_s28 + $0x20] sm:$0xff] %v732_v16  ;;  %761 = vst.msk [vmem:[%s1315_s28 + $0x28] sm:$0xff] %vm251_vm0, %v733_v59  ;;  %v716_v52 = vpop.permute.xlu0 %715 }
 0x180   : > { %v681_v17 = vpop.permute.xlu1 %680  ;;  %v750_v49 = vadd.f32 %v716_v52, %v652_v30  ;;  %v751_v42 = vadd.f32 %v716_v52, %v653_v39 }
 0x181   : > { %v736_v40 = vadd.f32 %v681_v17, %v638_v0  ;;  %v737_v38 = vadd.f32 %v681_v17, %v639_v1 }
 0x182   : > { %778 = vst [vmem:[%s1315_s28 + $0xb0] sm:$0xff] %v750_v49  ;;  %779 = vst.msk [vmem:[%s1315_s28 + $0xb8] sm:$0xff] %vm251_vm0, %v751_v42 }
 0x183   : > { %764 = vst [vmem:[%s1315_s28 + $0x40] sm:$0xff] %v736_v40  ;;  %765 = vst.msk [vmem:[%s1315_s28 + $0x48] sm:$0xff] %vm251_vm0, %v737_v38  ;;  %v726_v8 = vpop.permute.xlu0 %725 }
 0x184   : > { %v691_v48 = vpop.permute.xlu1 %690  ;;  %v754_v50 = vadd.f32 %v726_v8, %v656_v19  ;;  %v755_v46 = vadd.f32 %v726_v8, %v657_v20 }
 0x185   : > { %v740_v41 = vadd.f32 %v691_v48, %v642_v15  ;;  %v741_v35 = vadd.f32 %v691_v48, %v643_v57 }
 0x186   : > { %782 = vst [vmem:[%s1315_s28 + $0xd0] sm:$0xff] %v754_v50  ;;  %783 = vst.msk [vmem:[%s1315_s28 + $0xd8] sm:$0xff] %vm251_vm0, %v755_v46 }
 0x187   : > { %768 = vst [vmem:[%s1315_s28 + $0x60] sm:$0xff] %v740_v41  ;;  %769 = vst.msk [vmem:[%s1315_s28 + $0x68] sm:$0xff] %vm251_vm0, %v741_v35 }
 0x188   : > { %v701_v25 = vpop.permute.xlu1 %700 }
 0x189   : > { %v744_v13 = vadd.f32 %v701_v25, %v646_v28  ;;  %v745_v51 = vadd.f32 %v701_v25, %v647_v23 }
 0x18b   : > { %772 = vst [vmem:[%s1315_s28 + $0x80] sm:$0xff] %v744_v13  ;;  %773 = vst.msk [vmem:[%s1315_s28 + $0x88] sm:$0xff] %vm251_vm0, %v745_v51 }
 0x18c   : > { %v711_v36 = vpop.permute.xlu1 %710 }
 0x18d   : > { %v748_v31 = vadd.f32 %v711_v36, %v650_v32  ;;  %v749_v33 = vadd.f32 %v711_v36, %v651_v3 }
 0x18f   : > { %776 = vst [vmem:[%s1315_s28 + $0xa0] sm:$0xff] %v748_v31  ;;  %777 = vst.msk [vmem:[%s1315_s28 + $0xa8] sm:$0xff] %vm251_vm0, %v749_v33 }
 0x190   : > { %v721_v61 = vpop.permute.xlu1 %720 }
 0x191   : > { %v752_v44 = vadd.f32 %v721_v61, %v654_v10  ;;  %v753_v21 = vadd.f32 %v721_v61, %v655_v60 }
 0x193   : > { %780 = vst [vmem:[%s1315_s28 + $0xc0] sm:$0xff] %v752_v44  ;;  %781 = vst.msk [vmem:[%s1315_s28 + $0xc8] sm:$0xff] %vm251_vm0, %v753_v21 }
 0x194 PF: > { %s13_s12 = sadd.s32 1, %s926_s12  }
 0x195   : > { %p10_p4 = scmp.ge.s32.totalorder %s13_s12, 8  }
 0x197   :  { %12 = sbr.rel (!%p10_p4) target bundleno = 1 (0x1), region = 68 }

</bundles_post_ra>
